<compile_context>
chip_gen: v7x
topology: tpu7x:2x2x1
jax: 0.10.0
libtpu: 0.0.40
codegen_flags: <defaults>
</compile_context>

<pallas_src>
import functools

import jax
import jax.numpy as jnp
from jax.experimental import pallas as pl
from jax.experimental.pallas import tpu as pltpu


def _round_up(x, m):
    return ((x + m - 1) // m) * m


def padded_num_nodes(n, tm, tk):
    """Node-dim padding so both the row tile (tm) and K tile (tk) divide it."""
    return _round_up(n, max(tm, tk))


# ------------------------------- kernels ----------------------------------- #

def _encoder_rowtile_kernel(a_ref, xw_ref, b_ref, alpha_ref, o_ref):
    """Full-K path: one (tm, Np) @ (Np, Hp) dot per row tile, fused bias + PReLU."""
    h = jnp.dot(a_ref[...], xw_ref[...], preferred_element_type=jnp.float32)
    h = h + b_ref[...]
    o_ref[...] = jnp.where(h > 0, h, alpha_ref[...] * h).astype(o_ref.dtype)


def _encoder_ktiled_kernel(a_ref, xw_ref, b_ref, alpha_ref, o_ref, acc_ref, *, tk):
    """K-tiled fallback: XW VMEM-resident (constant index map), A streamed (tm, tk)."""
    k = pl.program_id(1)

    @pl.when(k == 0)
    def _():
        acc_ref[...] = jnp.zeros_like(acc_ref)

    kk = pl.multiple_of(k * tk, tk)
    acc_ref[...] += jnp.dot(a_ref[...], xw_ref[pl.ds(kk, tk), :],
                            preferred_element_type=jnp.float32)

    @pl.when(k == pl.num_programs(1) - 1)
    def _():
        h = acc_ref[...] + b_ref[...]
        o_ref[...] = jnp.where(h > 0, h, alpha_ref[...] * h).astype(o_ref.dtype)


# ------------------------------- wrapper ----------------------------------- #

def encoder_forward(a_hat_p, x, w, b, alpha, *, tm=256, tk=256,
                    out_dtype=jnp.float32, vmem_budget_bytes=48 << 20):
    """GCNConv (with bias) followed by per-channel PReLU.

    a_hat_p: (Np, Np) bf16 normalized adjacency, pre-padded so tm | Np and tk | Np
             (built once per graph by build_gcn_norm_adj and reused across calls).
    x: (N, Cin) features, w: (Cin, H), b: (H,), alpha: (H,) PReLU weight.
    Returns (N, H) in out_dtype.
    """
    N, _ = x.shape
    H = w.shape[1]
    Np = a_hat_p.shape[0]
    assert a_hat_p.shape == (Np, Np)
    assert Np >= N and Np % tm == 0 and Np % tk == 0

    Hp = _round_up(H, 128)  # lane-dense output / MXU N-dim

    # Hoisted feature transform (O(N*Cin*H); cheap vs the O(N^2*H) aggregation).
    xw = jnp.dot(x.astype(jnp.float32), w.astype(jnp.float32),
                 preferred_element_type=jnp.float32)
    xw_p = jnp.zeros((Np, Hp), jnp.bfloat16).at[:N, :H].set(xw.astype(jnp.bfloat16))
    b_p = jnp.zeros((1, Hp), jnp.float32).at[0, :H].set(b.astype(jnp.float32))
    al_p = jnp.zeros((1, Hp), jnp.float32).at[0, :H].set(alpha.astype(jnp.float32))

    out_bytes = jnp.dtype(out_dtype).itemsize
    # Conservative VMEM estimate for the full-K path (x2 for double buffering).
    est_fullk = 2 * (tm * Np * 2 + Np * Hp * 2 + 2 * Hp * 4 + tm * Hp * out_bytes)
    use_fullk = est_fullk <= vmem_budget_bytes

    if use_fullk:
        grid = (Np // tm,)
        in_specs = [
            pl.BlockSpec((tm, Np), lambda i: (i, 0)),    # A_hat row slab (bf16)
            pl.BlockSpec((Np, Hp), lambda i: (0, 0)),    # XW: VMEM-resident, DMA'd once
            pl.BlockSpec((1, Hp), lambda i: (0, 0)),     # bias
            pl.BlockSpec((1, Hp), lambda i: (0, 0)),     # PReLU alpha
        ]
        out_specs = pl.BlockSpec((tm, Hp), lambda i: (i, 0))
        scratch_shapes = []
        kernel = _encoder_rowtile_kernel
        dim_sem = ("parallel",)
        est = est_fullk
    else:
        # TODO(synk): for very large graphs also stream XW in K-stripes and use a
        # block-sparse scalar-prefetch index_map over nonzero A_hat tiles.
        grid = (Np // tm, Np // tk)
        in_specs = [
            pl.BlockSpec((tm, tk), lambda i, k: (i, k)),   # A_hat tile (bf16)
            pl.BlockSpec((Np, Hp), lambda i, k: (0, 0)),   # XW resident (constant map)
            pl.BlockSpec((1, Hp), lambda i, k: (0, 0)),    # bias
            pl.BlockSpec((1, Hp), lambda i, k: (0, 0)),    # PReLU alpha
        ]
        out_specs = pl.BlockSpec((tm, Hp), lambda i, k: (i, 0))
        scratch_shapes = [pltpu.VMEM((tm, Hp), jnp.float32)]
        kernel = functools.partial(_encoder_ktiled_kernel, tk=tk)
        dim_sem = ("parallel", "arbitrary")
        est = (2 * (tm * tk * 2 + Np * Hp * 2 + 2 * Hp * 4 + tm * Hp * out_bytes)
               + tm * Hp * 4)

    # Explicit VMEM limit: headroom over the estimate, capped at the v7x physical
    # ceiling (64 MiB / TensorCore) so the same config is portable to v5e/v6e/v7x.
    vmem_limit = int(min(max(est + (8 << 20), 32 << 20), 64 << 20))

    out = pl.pallas_call(
        kernel,
        out_shape=jax.ShapeDtypeStruct((Np, Hp), out_dtype),
        grid_spec=pltpu.PrefetchScalarGridSpec(
            num_scalar_prefetch=0,
            grid=grid,
            in_specs=in_specs,
            out_specs=out_specs,
            scratch_shapes=scratch_shapes,
        ),
        compiler_params=pltpu.CompilerParams(
            dimension_semantics=dim_sem,
            vmem_limit_bytes=vmem_limit),
    )(a_hat_p, xw_p, b_p, al_p)

    return out[:N, :H]


def build_gcn_norm_adj(edge_index, num_nodes, *, padded_nodes=None, dtype=jnp.float32):
    """Dense A_hat = D^{-1/2} (A + I) D^{-1/2} matching PyG GCNConv defaults
    (edge_weight=1, add_self_loops=True, symmetric normalization), built directly at
    the (optionally padded) shape and compute dtype so the forward pass never touches
    the O(N^2) array again.  Padded rows/cols have zero degree and stay exactly zero.
    Duplicate edges collapse to weight 1 (fine for simple graphs)."""
    # TODO(synk): for large sparse graphs, replace the dense A_hat with a block-sparse
    # neighbor-list formulation driven by PrefetchScalarGridSpec (per-row-tile lists of
    # nonzero K tiles) so empty (tm, tk) tiles are never DMA'd or matmul'd.
    n_p = num_nodes if padded_nodes is None else padded_nodes
    src, dst = edge_index[0], edge_index[1]
    loop = jnp.arange(num_nodes)
    src = jnp.concatenate([src, loop])
    dst = jnp.concatenate([dst, loop])
    # A[i, j] = 1 if there is an edge j -> i (message from j aggregated into i).
    A = jnp.zeros((n_p, n_p), jnp.float32).at[dst, src].set(1.0)
    deg = A.sum(axis=1)
    dinv = jnp.where(deg > 0, 1.0 / jnp.sqrt(deg), 0.0)
    return (dinv[:, None] * A * dinv[None, :]).astype(dtype)


if __name__ == "__main__":
    N = 16            # number of nodes
    IN_CH = 16        # in_channels
    HID = 32          # hidden_channels
    TM = 256          # row tile (full MXU width on v6e/v7x)

    key = jax.random.PRNGKey(0)
    kx, kw = jax.random.split(key)

    # Node features
    x = jax.random.normal(kx, (N, IN_CH), dtype=jnp.float32)

    # Deterministic small graph: undirected ring (both directions per edge)
    fwd = jnp.stack([jnp.arange(N), (jnp.arange(N) + 1) % N])
    edge_index = jnp.concatenate([fwd, fwd[::-1]], axis=1)  # shape (2, 2N)

    # GCNConv parameters (glorot-ish weight, zero bias) and PReLU weight (default 0.25)
    scale = jnp.sqrt(2.0 / (IN_CH + HID))
    w = scale * jax.random.normal(kw, (IN_CH, HID), dtype=jnp.float32)
    b = jnp.zeros((HID,), dtype=jnp.float32)
    alpha = jnp.full((HID,), 0.25, dtype=jnp.float32)

    # Built ONCE per graph (static in transductive training) at padded bf16 shape;
    # reused across all forward calls.
    Np = padded_num_nodes(N, TM, TM)
    a_hat_p = build_gcn_norm_adj(edge_index, N, padded_nodes=Np, dtype=jnp.bfloat16)

    out = encoder_forward(a_hat_p, x, w, b, alpha, tm=TM, tk=TM)
    jax.block_until_ready(out)
    assert out.shape == (N, HID)

    # Reference (pure f32 XLA): H = A_hat @ (X @ W) + b, then per-channel PReLU.
    a_ref = build_gcn_norm_adj(edge_index, N, dtype=jnp.float32)
    h_ref = a_ref @ (x @ w) + b[None, :]
    ref = jnp.where(h_ref > 0, h_ref, alpha[None, :] * h_ref)
    max_err = float(jnp.max(jnp.abs(out - ref)))
    assert max_err < 5e-2, f"max abs error too large: {max_err}"  # bf16 operands, f32 accum

    print("KERNEL_OK")
</pallas_src>

<mosaic_0001>
module attributes {stable_mosaic.version = 11 : i64} {
  func.func @_encoder_rowtile_kernel(%arg0: i32, %arg1: memref<256x256xbf16, #tpu.memory_space<vmem>>, %arg2: memref<256x128xbf16, #tpu.memory_space<vmem>>, %arg3: memref<1x128xf32, #tpu.memory_space<vmem>>, %arg4: memref<1x128xf32, #tpu.memory_space<vmem>>, %arg5: memref<256x128xf32, #tpu.memory_space<vmem>>) attributes {dimension_semantics = [#tpu.dimension_semantics<parallel>], iteration_bounds = array<i64: 1>, scalar_prefetch = 0 : i64, scratch_operands = 0 : i64, tpu.core_type = #tpu.core_type<tc>, window_params = [{transform_indices = @transform_0, window_bounds = array<i64: 256, 256>}, {pipeline_mode = #tpu.pipeline_mode<synchronous>, transform_indices = @transform_1, window_bounds = array<i64: 256, 128>}, {pipeline_mode = #tpu.pipeline_mode<synchronous>, transform_indices = @transform_2, window_bounds = array<i64: 1, 128>}, {pipeline_mode = #tpu.pipeline_mode<synchronous>, transform_indices = @transform_3, window_bounds = array<i64: 1, 128>}, {transform_indices = @transform_4, window_bounds = array<i64: 256, 128>}]} {
    %c0 = arith.constant 0 : index
    %c0_0 = arith.constant 0 : index
    %0 = vector.load %arg1[%c0, %c0_0] : memref<256x256xbf16, #tpu.memory_space<vmem>>, vector<256x256xbf16>
    %c0_1 = arith.constant 0 : index
    %c0_2 = arith.constant 0 : index
    %1 = vector.load %arg2[%c0_1, %c0_2] : memref<256x128xbf16, #tpu.memory_space<vmem>>, vector<256x128xbf16>
    %cst = arith.constant dense<0.000000e+00> : vector<256x128xf32>
    %2 = tpu.matmul %0, %1, %cst {dimension_numbers = #tpu.dot_dimension_numbers<[1], [0], [0], [1], [0, 0, 1, 1], [], []>} : vector<256x256xbf16>, vector<256x128xbf16>, vector<256x128xf32> -> vector<256x128xf32>
    %c0_3 = arith.constant 0 : index
    %c0_4 = arith.constant 0 : index
    %3 = vector.load %arg3[%c0_3, %c0_4] : memref<1x128xf32, #tpu.memory_space<vmem>>, vector<1x128xf32>
    %4 = vector.broadcast %3 : vector<1x128xf32> to vector<256x128xf32>
    %5 = arith.addf %2, %4 : vector<256x128xf32>
    %cst_5 = arith.constant 0.000000e+00 : f32
    %6 = vector.broadcast %cst_5 : f32 to vector<256x128xf32>
    %7 = arith.cmpf ogt, %5, %6 : vector<256x128xf32>
    %c0_6 = arith.constant 0 : index
    %c0_7 = arith.constant 0 : index
    %8 = vector.load %arg4[%c0_6, %c0_7] : memref<1x128xf32, #tpu.memory_space<vmem>>, vector<1x128xf32>
    %9 = vector.broadcast %8 : vector<1x128xf32> to vector<256x128xf32>
    %10 = arith.mulf %9, %5 : vector<256x128xf32>
    %11 = arith.select %7, %5, %10 : vector<256x128xi1>, vector<256x128xf32>
    %c0_8 = arith.constant 0 : index
    %c0_9 = arith.constant 0 : index
    %12 = vector.load %arg5[%c0_8, %c0_9] : memref<256x128xf32, #tpu.memory_space<vmem>>, vector<256x128xf32>
    tpu.vector_store %arg5[%c0_8, %c0_9], %11 {strides = array<i32>} : memref<256x128xf32, #tpu.memory_space<vmem>>, vector<256x128xf32>,
    return
  }
  func.func @transform_0(%arg0: i32) -> (i32, i32) {
    %c0_i32 = arith.constant 0 : i32
    %c0_i32_0 = arith.constant 0 : i32
    return %arg0, %c0_i32 : i32, i32
  }
  func.func @transform_1(%arg0: i32) -> (i32, i32) {
    %c0_i32 = arith.constant 0 : i32
    %c0_i32_0 = arith.constant 0 : i32
    %c0_i32_1 = arith.constant 0 : i32
    return %c0_i32, %c0_i32_0 : i32, i32
  }
  func.func @transform_2(%arg0: i32) -> (i32, i32) {
    %c0_i32 = arith.constant 0 : i32
    %c0_i32_0 = arith.constant 0 : i32
    %c0_i32_1 = arith.constant 0 : i32
    return %c0_i32, %c0_i32_0 : i32, i32
  }
  func.func @transform_3(%arg0: i32) -> (i32, i32) {
    %c0_i32 = arith.constant 0 : i32
    %c0_i32_0 = arith.constant 0 : i32
    %c0_i32_1 = arith.constant 0 : i32
    return %c0_i32, %c0_i32_0 : i32, i32
  }
  func.func @transform_4(%arg0: i32) -> (i32, i32) {
    %c0_i32 = arith.constant 0 : i32
    %c0_i32_0 = arith.constant 0 : i32
    return %arg0, %c0_i32 : i32, i32
  }
}

</mosaic_0001>

<bundles_post_ra>
// kernel: tpu_custom_call.1
= control target key start
LH: loop header
LB: loop body
LE: loop exit
PB: predicated region body
PF: predicated region fallthrough
CT: control target
= control target key end

     0   :  { %9 = vsyncpa [#allocation3], 0  ;;  %s1157_s0 = inlined_call_operand.hbm [shape: bf16[256,256], index: 0, kind: input, shape index: {}]   ;;  %s1158_s1 = inlined_call_operand.hbm [shape: bf16[256,128], index: 1, kind: input, shape index: {}]   ;;  %s1159_s2 = inlined_call_operand.vmem [shape: f32[1,128], index: 2, kind: input, shape index: {}]   ;;  %s1160_s3 = inlined_call_operand.vmem [shape: f32[1,128], index: 3, kind: input, shape index: {}]   ;;  %s1161_s4 = inlined_call_operand.hbm [shape: f32[256,128], index: 4, kind: output, shape index: {}]  }
   0x1   :  { %10 = vsyncpa [#allocation6], 0 }
   0x2   :  { %11 = vsyncpa [#allocation4], 0  ;;  %s1009_s15 = smov [#allocation2]   ;;  %s937_s19 = scalar_lea.hbm %s1157_s0, 4096 }
   0x3   :  { %s17_s16 = sshll.u32 %s1009_s15, 4  ;;  %p938_p0 = scmp.ne.s32.totalorder %s1157_s0, %s937_s19  ;;  %s18_s16 = int_to_ptr.vmem [resolvable:$true] %s17_s16 }
   0x4   :  { %p941_p1 = scmp.lt.u32.totalorder %s937_s19, %s1157_s0 }
   0x6   :  { %p943_p2 = pnand %p941_p1, %p938_p0 }
   0x8   :  { %946 = shalt.err (!%p943_p2)
}
   0x9   :  { %s947_s24 = scalar_lea.vmem %s18_s16, 4096  ;;  %p952_p4 = scmp.lt.s32.totalorder %s18_s16, %s18_s16 }
   0xa   :  { %p948_p3 = scmp.ne.s32.totalorder %s18_s16, %s947_s24  ;;  %p953_p5 = scmp.lt.s32.totalorder %s947_s24, %s947_s24 }
   0xc   :  { %p954_p6 = por %p953_p5, %p952_p4 }
   0xe   :  { %p955_p7 = pnand %p954_p6, %p948_p3 }
  0x10   :  { %958 = shalt.err (!%p955_p7)
}
  0x11   :  { %s1010_s25 = smov 128   ;;  %s1011_s26 = smov 8  }
  0x12   :  { %23 = dma.hbm_to_vmem [thread:$0]  %s1157_s0, 4096, %s18_s16, [#allocation3], %s1010_s25, %s1010_s25, %s1011_s26  }
  0x13   :  { %s1012_s29 = smov [#allocation5]   ;;  %s959_s7 = scalar_lea.hbm %s1158_s1, 2048 }
  0x14   :  { %s29_s30 = sshll.u32 %s1012_s29, 4  ;;  %p960_p8 = scmp.ne.s32.totalorder %s1158_s1, %s959_s7  ;;  %s30_s30 = int_to_ptr.vmem [resolvable:$true] %s29_s30 }
  0x15   :  { %p963_p9 = scmp.lt.u32.totalorder %s959_s7, %s1158_s1 }
  0x17   :  { %p965_p10 = pnand %p963_p9, %p960_p8 }
  0x19   :  { %968 = shalt.err (!%p965_p10)
}
  0x1a   :  { %s969_s12 = scalar_lea.vmem %s30_s30, 2048  ;;  %p974_p12 = scmp.lt.s32.totalorder %s30_s30, %s30_s30 }
  0x1b   :  { %p970_p11 = scmp.ne.s32.totalorder %s30_s30, %s969_s12  ;;  %p975_p13 = scmp.lt.s32.totalorder %s969_s12, %s969_s12 }
  0x1d   :  { %p976_p0 = por %p975_p13, %p974_p12 }
  0x1f   :  { %p977_p1 = pnand %p976_p0, %p970_p11 }
  0x21   :  { %980 = shalt.err (!%p977_p1)
}
  0x22   :  { %s1013_s0 = smov 64   ;;  %s1014_s13 = smov 4  }
  0x23   :  { %35 = dma.hbm_to_vmem [thread:$0]  %s1158_s1, 2048, %s30_s30, [#allocation6], %s1013_s0, %s1013_s0, %s1014_s13  }
  0x24   :  { %1003 = dma.done.wait [#allocation3], 4096  }
  0x25   :  { %1004 = vsyncadd [#allocation3], 4294963200 }
  0x26   :  { %1005 = dma.done.wait [#allocation6], 2048  }
  0x27   :  { %1006 = vsyncadd [#allocation6], 4294965248  ;;  %v873_v0 = vld [vmem:[#allocation5 + $0x40] sm:$0xff]   ;;  %v875_v2 = vld [vmem:[#allocation5 + $0x48] sm:$0xff]  }
  0x28   :  { %v874_v1 = vld [vmem:[#allocation5] sm:$0xff]   ;;  %738 = vmatprep.subr.bf16.mxu0 %v873_v0  ;;  %850 = vmatprep.subr.bf16.mxu1 %v873_v0  ;;  %v876_v3 = vld [vmem:[#allocation5 + $0x8] sm:$0xff]   ;;  %v877_v4 = vld [vmem:[#allocation5 + $0x50] sm:$0xff]  }
  0x29   :  { %739 = vmatpush3.bf16.msra.mxu0 %v874_v1  ;;  %858 = vmatpush3.bf16.msra.mxu1 %v874_v1  ;;  %v878_v5 = vld [vmem:[#allocation5 + $0x10] sm:$0xff]   ;;  %v879_v6 = vld [vmem:[#allocation5 + $0x58] sm:$0xff]   ;;  %v881_v8 = vld [vmem:[#allocation5 + $0x60] sm:$0xff]  }
  0x2a   :  { %740 = vmatprep.subr.bf16.mxu0 %v875_v2  ;;  %851 = vmatprep.subr.bf16.mxu1 %v875_v2  ;;  %v880_v7 = vld [vmem:[#allocation5 + $0x18] sm:$0xff]   ;;  %v882_v9 = vld [vmem:[#allocation5 + $0x20] sm:$0xff]   ;;  %v883_v10 = vld [vmem:[#allocation5 + $0x68] sm:$0xff]  }
  0x2b   :  { %v891_v11 = vld [vmem:[#allocation2 + $0x4] ss:$8 sps:$4 sm:$0xff]   ;;  %v885_v14 = vld [vmem:[#allocation5 + $0x70] sm:$0xff]   ;;  %v887_v16 = vld [vmem:[#allocation5 + $0x78] sm:$0xff]  }
  0x2c   :  { %v894_v12 = vld [vmem:[#allocation2 + $0x84] ss:$8 sps:$4 sm:$0xff]   ;;  %406 = vmatprep.mubr.bf16.mxu0 %v891_v11  ;;  %v886_v15 = vld [vmem:[#allocation5 + $0x30] sm:$0xff]   ;;  %v888_v17 = vld [vmem:[#allocation5 + $0x38] sm:$0xff]  }
  0x2d   :  { %741 = vmatpush3.bf16.msra.mxu0 %v876_v3  ;;  %859 = vmatpush3.bf16.msra.mxu1 %v876_v3  ;;  %v884_v13 = vld [vmem:[#allocation5 + $0x28] sm:$0xff]   ;;  %v895_v20 = vld [vmem:[#allocation2 + $0x14] ss:$8 sps:$4 sm:$0xff]   ;;  %v899_v22 = vld [vmem:[#allocation2 + $0x10] ss:$8 sps:$4 sm:$0xff]  }
  0x2e   :  { %742 = vmatprep.subr.bf16.mxu0 %v877_v4  ;;  %852 = vmatprep.subr.bf16.mxu1 %v877_v4  ;;  %v889_v18 = vld [vmem:[#allocation2] ss:$8 sps:$4 sm:$0xff]   ;;  %v897_v21 = vld [vmem:[#allocation2 + $0x94] ss:$8 sps:$4 sm:$0xff]   ;;  %v900_v23 = vld [vmem:[#allocation2 + $0x90] ss:$8 sps:$4 sm:$0xff]  }
  0x2f   :  { %470 = vmatprep.mubr.bf16.mxu1 %v894_v12  ;;  %v892_v19 = vld [vmem:[#allocation2 + $0x80] ss:$8 sps:$4 sm:$0xff]   ;;  %v901_v24 = vld [vmem:[#allocation2 + $0x24] ss:$8 sps:$4 sm:$0xff]   ;;  %v907_v28 = vld [vmem:[#allocation2 + $0x34] ss:$8 sps:$4 sm:$0xff]  }
  0x30   :  { %v903_v25 = vld [vmem:[#allocation2 + $0xa4] ss:$8 sps:$4 sm:$0xff]   ;;  %v905_v26 = vld [vmem:[#allocation2 + $0x20] ss:$8 sps:$4 sm:$0xff]   ;;  %v909_v29 = vld [vmem:[#allocation2 + $0xb4] ss:$8 sps:$4 sm:$0xff]  }
  0x31   :  { %743 = vmatpush3.bf16.msra.mxu0 %v878_v5  ;;  %860 = vmatpush3.bf16.msra.mxu1 %v878_v5  ;;  %v906_v27 = vld [vmem:[#allocation2 + $0xa0] ss:$8 sps:$4 sm:$0xff]   ;;  %v911_v30 = vld [vmem:[#allocation2 + $0x30] ss:$8 sps:$4 sm:$0xff]   ;;  %v913_v32 = vld [vmem:[#allocation2 + $0x44] ss:$8 sps:$4 sm:$0xff]  }
  0x32   :  { %744 = vmatprep.subr.bf16.mxu0 %v879_v6  ;;  %853 = vmatprep.subr.bf16.mxu1 %v879_v6  ;;  %v912_v31 = vld [vmem:[#allocation2 + $0xb0] ss:$8 sps:$4 sm:$0xff]   ;;  %v915_v33 = vld [vmem:[#allocation2 + $0xc4] ss:$8 sps:$4 sm:$0xff]   ;;  %v917_v34 = vld [vmem:[#allocation2 + $0x40] ss:$8 sps:$4 sm:$0xff]  }
  0x33   :  { %v918_v35 = vld [vmem:[#allocation2 + $0xc0] ss:$8 sps:$4 sm:$0xff]   ;;  %v919_v36 = vld [vmem:[#allocation2 + $0x54] ss:$8 sps:$4 sm:$0xff]   ;;  %v923_v38 = vld [vmem:[#allocation2 + $0x50] ss:$8 sps:$4 sm:$0xff]  }
  0x34   :  { %v921_v37 = vld [vmem:[#allocation2 + $0xd4] ss:$8 sps:$4 sm:$0xff]   ;;  %v924_v39 = vld [vmem:[#allocation2 + $0xd0] ss:$8 sps:$4 sm:$0xff]   ;;  %v925_v40 = vld [vmem:[#allocation2 + $0x64] ss:$8 sps:$4 sm:$0xff]  }
  0x35   :  { %745 = vmatpush3.bf16.msra.mxu0 %v880_v7  ;;  %861 = vmatpush3.bf16.msra.mxu1 %v880_v7  ;;  %v927_v41 = vld [vmem:[#allocation2 + $0xe4] ss:$8 sps:$4 sm:$0xff]   ;;  %v929_v42 = vld [vmem:[#allocation2 + $0x60] ss:$8 sps:$4 sm:$0xff]   ;;  %v931_v44 = vld [vmem:[#allocation2 + $0x74] ss:$8 sps:$4 sm:$0xff]  }
  0x36   :  { %746 = vmatprep.subr.bf16.mxu0 %v881_v8  ;;  %854 = vmatprep.subr.bf16.mxu1 %v881_v8  ;;  %v930_v43 = vld [vmem:[#allocation2 + $0xe0] ss:$8 sps:$4 sm:$0xff]   ;;  %v933_v45 = vld [vmem:[#allocation2 + $0xf4] ss:$8 sps:$4 sm:$0xff]   ;;  %v935_v46 = vld [vmem:[#allocation2 + $0x70] ss:$8 sps:$4 sm:$0xff]  }
  0x37   :  { %v936_v47 = vld [vmem:[#allocation2 + $0xf0] ss:$8 sps:$4 sm:$0xff]   ;;  %v1071_v50 = vld [vmem:[%s1159_s2] ss:$0 sm:$0xff]  ;;  %s1015_s2 = smov [#allocation7]  }
  0x38   :  { %v1076_v57 = vld [vmem:[%s1160_s3] ss:$0 sm:$0xff]  ;;  %s675_s3 = sshll.u32 %s1015_s2, 4  ;;  %s676_s3 = int_to_ptr.vmem [resolvable:$true] %s675_s3 }
  0x39   :  { %747 = vmatpush3.bf16.msra.mxu0 %v882_v9  ;;  %862 = vmatpush3.bf16.msra.mxu1 %v882_v9  ;;  %s981_s19 = scalar_lea.vmem %s676_s3, 4096  ;;  %p986_p3 = scmp.lt.s32.totalorder %s676_s3, %s676_s3 }
  0x3a   :  { %748 = vmatprep.subr.bf16.mxu0 %v883_v10  ;;  %855 = vmatprep.subr.bf16.mxu1 %v883_v10  ;;  %p982_p2 = scmp.ne.s32.totalorder %s676_s3, %s981_s19  ;;  %p987_p4 = scmp.lt.s32.totalorder %s981_s19, %s981_s19 }
  0x3c   :  { %p988_p5 = por %p987_p4, %p986_p3 }
  0x3d   :  { %749 = vmatpush3.bf16.msra.mxu0 %v884_v13  ;;  %863 = vmatpush3.bf16.msra.mxu1 %v884_v13 }
  0x3e   :  { %750 = vmatprep.subr.bf16.mxu0 %v885_v14  ;;  %856 = vmatprep.subr.bf16.mxu1 %v885_v14  ;;  %p989_p6 = pnand %p988_p5, %p982_p2 }
  0x41   :  { %751 = vmatpush3.bf16.msra.mxu0 %v886_v15  ;;  %864 = vmatpush3.bf16.msra.mxu1 %v886_v15 }
  0x42   :  { %752 = vmatprep.subr.bf16.mxu0 %v887_v16  ;;  %857 = vmatprep.subr.bf16.mxu1 %v887_v16 }
  0x45   :  { %753 = vmatpush3.bf16.msra.mxu0 %v888_v17  ;;  %865 = vmatpush3.bf16.msra.mxu1 %v888_v17 }
  0x48   :  { %407 = vmatmul.mubr.bf16.vlgmr.msra.gmra.mrb[0].mxu0 %v889_v18  ;;  %471 = vmatmul.mubr.bf16.vlgmr.msra.gmra.mrb[0].mxu1 %v892_v19 }
  0x49   :  { %414 = vmatprep.mubr.bf16.mxu0 %v895_v20  ;;  %478 = vmatprep.mubr.bf16.mxu1 %v897_v21 }
  0x50   :  { %415 = vmatmul.mubr.bf16.gmra.mrb[4].mxu0 %v899_v22  ;;  %479 = vmatmul.mubr.bf16.gmra.mrb[4].mxu1 %v900_v23 }
  0x51   :  { %422 = vmatprep.mubr.bf16.mxu0 %v901_v24  ;;  %486 = vmatprep.mubr.bf16.mxu1 %v903_v25 }
  0x58   :  { %423 = vmatmul.mubr.bf16.gmra.mrb[8].mxu0 %v905_v26  ;;  %487 = vmatmul.mubr.bf16.gmra.mrb[8].mxu1 %v906_v27 }
  0x59   :  { %430 = vmatprep.mubr.bf16.mxu0 %v907_v28  ;;  %494 = vmatprep.mubr.bf16.mxu1 %v909_v29 }
  0x60   :  { %431 = vmatmul.mubr.bf16.gmra.mrb[12].mxu0 %v911_v30  ;;  %495 = vmatmul.mubr.bf16.gmra.mrb[12].mxu1 %v912_v31 }
  0x61   :  { %438 = vmatprep.mubr.bf16.mxu0 %v913_v32  ;;  %502 = vmatprep.mubr.bf16.mxu1 %v915_v33 }
  0x68   :  { %439 = vmatmul.mubr.bf16.gmra.mrb[16].mxu0 %v917_v34  ;;  %503 = vmatmul.mubr.bf16.gmra.mrb[16].mxu1 %v918_v35 }
  0x69   :  { %446 = vmatprep.mubr.bf16.mxu0 %v919_v36  ;;  %510 = vmatprep.mubr.bf16.mxu1 %v921_v37 }
  0x70   :  { %447 = vmatmul.mubr.bf16.gmra.mrb[20].mxu0 %v923_v38  ;;  %511 = vmatmul.mubr.bf16.gmra.mrb[20].mxu1 %v924_v39 }
  0x71   :  { %454 = vmatprep.mubr.bf16.mxu0 %v925_v40  ;;  %518 = vmatprep.mubr.bf16.mxu1 %v927_v41 }
  0x78   :  { %455 = vmatmul.mubr.bf16.gmra.mrb[24].mxu0 %v929_v42  ;;  %519 = vmatmul.mubr.bf16.gmra.mrb[24].mxu1 %v930_v43 }
  0x79   :  { %462 = vmatprep.mubr.bf16.mxu0 %v931_v44  ;;  %526 = vmatprep.mubr.bf16.mxu1 %v933_v45 }
  0x80   :  { %463 = vmatmul.mubr.bf16.gmra.mrb[28].mxu0 %v935_v46  ;;  %527 = vmatmul.mubr.bf16.gmra.mrb[28].mxu1 %v936_v47 }
 0x11b   :  { %v754_v48 = vpop.f32.mrb[0].mxu0  ;;  %v802_v49 = vpop.f32.mrb[0].mxu1 }
 0x11c   :  { %v755_v51 = vpop.f32.mrb[1].mxu0  ;;  %v803_v52 = vpop.f32.mrb[1].mxu1 }
 0x11d   :  { %v756_v53 = vadd.f32 %v755_v51, %v754_v48  ;;  %v804_v54 = vadd.f32 %v803_v52, %v802_v49  ;;  %v757_v55 = vpop.f32.mrb[2].mxu0  ;;  %v805_v56 = vpop.f32.mrb[2].mxu1 }
 0x11e   :  { %v758_v58 = vpop.f32.mrb[3].mxu0  ;;  %v806_v59 = vpop.f32.mrb[3].mxu1 }
 0x11f   :  { %v409_v60 = vadd.f32 %v756_v53, %v1071_v50  ;;  %v473_v61 = vadd.f32 %v804_v54, %v1071_v50  ;;  %v759_v62 = vadd.f32 %v758_v58, %v757_v55  ;;  %v807_v63 = vadd.f32 %v806_v59, %v805_v56 }
 0x121   :  { %vm535_vm0 = vcmp.gt.f32.partialorder %v409_v60, 0.0  ;;  %v574_v0 = vmul.f32 %v1076_v57, %v409_v60  ;;  %vm551_vm1 = vcmp.gt.f32.partialorder %v473_v61, 0.0  ;;  %v590_v1 = vmul.f32 %v1076_v57, %v473_v61 }
 0x122   :  { %v412_v2 = vadd.f32 %v759_v62, %v1071_v50  ;;  %v476_v3 = vadd.f32 %v807_v63, %v1071_v50 }
 0x123   :  { %v606_v4 = vsel %vm535_vm0, %v409_v60, %v574_v0  ;;  %v622_v5 = vsel %vm551_vm1, %v473_v61, %v590_v1  ;;  %v760_v6 = vpop.f32.mrb[4].mxu0  ;;  %v808_v7 = vpop.f32.mrb[4].mxu1 }
 0x124   :  { %638 = vst [vmem:[#allocation7] sm:$0xff] %v606_v4  ;;  %654 = vst [vmem:[#allocation7 + $0x80] sm:$0xff] %v622_v5  ;;  %vm536_vm2 = vcmp.gt.f32.partialorder %v412_v2, 0.0  ;;  %v575_v8 = vmul.f32 %v1076_v57, %v412_v2  ;;  %vm552_vm3 = vcmp.gt.f32.partialorder %v476_v3, 0.0  ;;  %v591_v9 = vmul.f32 %v1076_v57, %v476_v3  ;;  %v761_v10 = vpop.f32.mrb[5].mxu0  ;;  %v809_v11 = vpop.f32.mrb[5].mxu1 }
 0x125   :  { %v762_v12 = vadd.f32 %v761_v10, %v760_v6  ;;  %v810_v13 = vadd.f32 %v809_v11, %v808_v7  ;;  %v763_v14 = vpop.f32.mrb[6].mxu0  ;;  %v811_v15 = vpop.f32.mrb[6].mxu1 }
 0x126   :  { %v607_v16 = vsel %vm536_vm2, %v412_v2, %v575_v8  ;;  %v623_v17 = vsel %vm552_vm3, %v476_v3, %v591_v9  ;;  %v764_v18 = vpop.f32.mrb[7].mxu0  ;;  %v812_v19 = vpop.f32.mrb[7].mxu1 }
 0x127   :  { %639 = vst [vmem:[#allocation7 + $0x8] sm:$0xff] %v607_v16  ;;  %655 = vst [vmem:[#allocation7 + $0x88] sm:$0xff] %v623_v17  ;;  %v417_v20 = vadd.f32 %v762_v12, %v1071_v50  ;;  %v481_v21 = vadd.f32 %v810_v13, %v1071_v50  ;;  %v765_v22 = vadd.f32 %v764_v18, %v763_v14 }
 0x128   :  { %v813_v23 = vadd.f32 %v812_v19, %v811_v15 }
 0x129   :  { %vm537_vm4 = vcmp.gt.f32.partialorder %v417_v20, 0.0  ;;  %v576_v24 = vmul.f32 %v1076_v57, %v417_v20  ;;  %vm553_vm5 = vcmp.gt.f32.partialorder %v481_v21, 0.0  ;;  %v592_v25 = vmul.f32 %v1076_v57, %v481_v21 }
 0x12a   :  { %v420_v26 = vadd.f32 %v765_v22, %v1071_v50  ;;  %v484_v27 = vadd.f32 %v813_v23, %v1071_v50 }
 0x12b   :  { %v608_v28 = vsel %vm537_vm4, %v417_v20, %v576_v24  ;;  %v624_v29 = vsel %vm553_vm5, %v481_v21, %v592_v25  ;;  %v766_v30 = vpop.f32.mrb[8].mxu0  ;;  %v814_v31 = vpop.f32.mrb[8].mxu1 }
 0x12c   :  { %640 = vst [vmem:[#allocation7 + $0x10] sm:$0xff] %v608_v28  ;;  %656 = vst [vmem:[#allocation7 + $0x90] sm:$0xff] %v624_v29  ;;  %vm538_vm6 = vcmp.gt.f32.partialorder %v420_v26, 0.0  ;;  %v577_v32 = vmul.f32 %v1076_v57, %v420_v26  ;;  %vm554_vm7 = vcmp.gt.f32.partialorder %v484_v27, 0.0  ;;  %v593_v33 = vmul.f32 %v1076_v57, %v484_v27  ;;  %v767_v34 = vpop.f32.mrb[9].mxu0  ;;  %v815_v35 = vpop.f32.mrb[9].mxu1 }
 0x12d   :  { %v768_v36 = vadd.f32 %v767_v34, %v766_v30  ;;  %v816_v37 = vadd.f32 %v815_v35, %v814_v31  ;;  %v769_v38 = vpop.f32.mrb[10].mxu0  ;;  %v817_v39 = vpop.f32.mrb[10].mxu1 }
 0x12e   :  { %v609_v40 = vsel %vm538_vm6, %v420_v26, %v577_v32  ;;  %v625_v41 = vsel %vm554_vm7, %v484_v27, %v593_v33  ;;  %v770_v42 = vpop.f32.mrb[11].mxu0  ;;  %v818_v43 = vpop.f32.mrb[11].mxu1 }
 0x12f   :  { %641 = vst [vmem:[#allocation7 + $0x18] sm:$0xff] %v609_v40  ;;  %657 = vst [vmem:[#allocation7 + $0x98] sm:$0xff] %v625_v41  ;;  %v425_v44 = vadd.f32 %v768_v36, %v1071_v50  ;;  %v489_v45 = vadd.f32 %v816_v37, %v1071_v50  ;;  %v771_v46 = vadd.f32 %v770_v42, %v769_v38 }
 0x130   :  { %v819_v47 = vadd.f32 %v818_v43, %v817_v39 }
 0x131   :  { %vm539_vm8 = vcmp.gt.f32.partialorder %v425_v44, 0.0  ;;  %v578_v48 = vmul.f32 %v1076_v57, %v425_v44  ;;  %vm555_vm9 = vcmp.gt.f32.partialorder %v489_v45, 0.0  ;;  %v594_v49 = vmul.f32 %v1076_v57, %v489_v45 }
 0x132   :  { %v428_v51 = vadd.f32 %v771_v46, %v1071_v50  ;;  %v492_v52 = vadd.f32 %v819_v47, %v1071_v50 }
 0x133   :  { %v610_v53 = vsel %vm539_vm8, %v425_v44, %v578_v48  ;;  %v626_v54 = vsel %vm555_vm9, %v489_v45, %v594_v49  ;;  %v772_v55 = vpop.f32.mrb[12].mxu0  ;;  %v820_v56 = vpop.f32.mrb[12].mxu1 }
 0x134   :  { %642 = vst [vmem:[#allocation7 + $0x20] sm:$0xff] %v610_v53  ;;  %658 = vst [vmem:[#allocation7 + $0xa0] sm:$0xff] %v626_v54  ;;  %vm540_vm10 = vcmp.gt.f32.partialorder %v428_v51, 0.0  ;;  %v579_v58 = vmul.f32 %v1076_v57, %v428_v51  ;;  %vm556_vm11 = vcmp.gt.f32.partialorder %v492_v52, 0.0  ;;  %v595_v59 = vmul.f32 %v1076_v57, %v492_v52  ;;  %v773_v60 = vpop.f32.mrb[13].mxu0  ;;  %v821_v61 = vpop.f32.mrb[13].mxu1 }
 0x135   :  { %v774_v62 = vadd.f32 %v773_v60, %v772_v55  ;;  %v822_v63 = vadd.f32 %v821_v61, %v820_v56  ;;  %v775_v0 = vpop.f32.mrb[14].mxu0  ;;  %v823_v1 = vpop.f32.mrb[14].mxu1 }
 0x136   :  { %v611_v2 = vsel %vm540_vm10, %v428_v51, %v579_v58  ;;  %v627_v3 = vsel %vm556_vm11, %v492_v52, %v595_v59  ;;  %v776_v4 = vpop.f32.mrb[15].mxu0  ;;  %v824_v5 = vpop.f32.mrb[15].mxu1 }
 0x137   :  { %643 = vst [vmem:[#allocation7 + $0x28] sm:$0xff] %v611_v2  ;;  %659 = vst [vmem:[#allocation7 + $0xa8] sm:$0xff] %v627_v3  ;;  %v433_v6 = vadd.f32 %v774_v62, %v1071_v50  ;;  %v497_v7 = vadd.f32 %v822_v63, %v1071_v50  ;;  %v777_v8 = vadd.f32 %v776_v4, %v775_v0 }
 0x138   :  { %v825_v9 = vadd.f32 %v824_v5, %v823_v1 }
 0x139   :  { %vm541_vm12 = vcmp.gt.f32.partialorder %v433_v6, 0.0  ;;  %v580_v10 = vmul.f32 %v1076_v57, %v433_v6  ;;  %vm557_vm13 = vcmp.gt.f32.partialorder %v497_v7, 0.0  ;;  %v596_v11 = vmul.f32 %v1076_v57, %v497_v7 }
 0x13a   :  { %v436_v12 = vadd.f32 %v777_v8, %v1071_v50  ;;  %v500_v13 = vadd.f32 %v825_v9, %v1071_v50 }
 0x13b   :  { %v612_v14 = vsel %vm541_vm12, %v433_v6, %v580_v10  ;;  %v628_v15 = vsel %vm557_vm13, %v497_v7, %v596_v11  ;;  %v778_v16 = vpop.f32.mrb[16].mxu0  ;;  %v826_v17 = vpop.f32.mrb[16].mxu1 }
 0x13c   :  { %644 = vst [vmem:[#allocation7 + $0x30] sm:$0xff] %v612_v14  ;;  %660 = vst [vmem:[#allocation7 + $0xb0] sm:$0xff] %v628_v15  ;;  %vm542_vm14 = vcmp.gt.f32.partialorder %v436_v12, 0.0  ;;  %v581_v18 = vmul.f32 %v1076_v57, %v436_v12  ;;  %vm558_vm15 = vcmp.gt.f32.partialorder %v500_v13, 0.0  ;;  %v597_v19 = vmul.f32 %v1076_v57, %v500_v13  ;;  %v779_v20 = vpop.f32.mrb[17].mxu0  ;;  %v827_v21 = vpop.f32.mrb[17].mxu1 }
 0x13d   :  { %v780_v22 = vadd.f32 %v779_v20, %v778_v16  ;;  %v828_v23 = vadd.f32 %v827_v21, %v826_v17  ;;  %v781_v24 = vpop.f32.mrb[18].mxu0  ;;  %v829_v25 = vpop.f32.mrb[18].mxu1 }
 0x13e   :  { %v613_v26 = vsel %vm542_vm14, %v436_v12, %v581_v18  ;;  %v629_v27 = vsel %vm558_vm15, %v500_v13, %v597_v19  ;;  %v782_v28 = vpop.f32.mrb[19].mxu0  ;;  %v830_v29 = vpop.f32.mrb[19].mxu1 }
 0x13f   :  { %645 = vst [vmem:[#allocation7 + $0x38] sm:$0xff] %v613_v26  ;;  %661 = vst [vmem:[#allocation7 + $0xb8] sm:$0xff] %v629_v27  ;;  %v441_v30 = vadd.f32 %v780_v22, %v1071_v50  ;;  %v505_v31 = vadd.f32 %v828_v23, %v1071_v50  ;;  %v783_v32 = vadd.f32 %v782_v28, %v781_v24 }
 0x140   :  { %v831_v33 = vadd.f32 %v830_v29, %v829_v25 }
 0x141   :  { %vm543_vm0 = vcmp.gt.f32.partialorder %v441_v30, 0.0  ;;  %v582_v34 = vmul.f32 %v1076_v57, %v441_v30  ;;  %vm559_vm1 = vcmp.gt.f32.partialorder %v505_v31, 0.0  ;;  %v598_v35 = vmul.f32 %v1076_v57, %v505_v31 }
 0x142   :  { %v444_v36 = vadd.f32 %v783_v32, %v1071_v50  ;;  %v508_v37 = vadd.f32 %v831_v33, %v1071_v50 }
 0x143   :  { %v614_v38 = vsel %vm543_vm0, %v441_v30, %v582_v34  ;;  %v630_v39 = vsel %vm559_vm1, %v505_v31, %v598_v35  ;;  %v784_v40 = vpop.f32.mrb[20].mxu0  ;;  %v832_v41 = vpop.f32.mrb[20].mxu1 }
 0x144   :  { %646 = vst [vmem:[#allocation7 + $0x40] sm:$0xff] %v614_v38  ;;  %662 = vst [vmem:[#allocation7 + $0xc0] sm:$0xff] %v630_v39  ;;  %vm544_vm2 = vcmp.gt.f32.partialorder %v444_v36, 0.0  ;;  %v583_v42 = vmul.f32 %v1076_v57, %v444_v36  ;;  %vm560_vm3 = vcmp.gt.f32.partialorder %v508_v37, 0.0  ;;  %v599_v43 = vmul.f32 %v1076_v57, %v508_v37  ;;  %v785_v44 = vpop.f32.mrb[21].mxu0  ;;  %v833_v45 = vpop.f32.mrb[21].mxu1 }
 0x145   :  { %v786_v46 = vadd.f32 %v785_v44, %v784_v40  ;;  %v834_v47 = vadd.f32 %v833_v45, %v832_v41  ;;  %v787_v48 = vpop.f32.mrb[22].mxu0  ;;  %v835_v49 = vpop.f32.mrb[22].mxu1 }
 0x146   :  { %v615_v51 = vsel %vm544_vm2, %v444_v36, %v583_v42  ;;  %v631_v52 = vsel %vm560_vm3, %v508_v37, %v599_v43  ;;  %v788_v53 = vpop.f32.mrb[23].mxu0  ;;  %v836_v54 = vpop.f32.mrb[23].mxu1 }
 0x147   :  { %647 = vst [vmem:[#allocation7 + $0x48] sm:$0xff] %v615_v51  ;;  %663 = vst [vmem:[#allocation7 + $0xc8] sm:$0xff] %v631_v52  ;;  %v449_v55 = vadd.f32 %v786_v46, %v1071_v50  ;;  %v513_v56 = vadd.f32 %v834_v47, %v1071_v50  ;;  %v789_v58 = vadd.f32 %v788_v53, %v787_v48 }
 0x148   :  { %v837_v59 = vadd.f32 %v836_v54, %v835_v49 }
 0x149   :  { %vm545_vm4 = vcmp.gt.f32.partialorder %v449_v55, 0.0  ;;  %v584_v60 = vmul.f32 %v1076_v57, %v449_v55  ;;  %vm561_vm5 = vcmp.gt.f32.partialorder %v513_v56, 0.0  ;;  %v600_v61 = vmul.f32 %v1076_v57, %v513_v56 }
 0x14a   :  { %v452_v62 = vadd.f32 %v789_v58, %v1071_v50  ;;  %v516_v63 = vadd.f32 %v837_v59, %v1071_v50 }
 0x14b   :  { %v616_v0 = vsel %vm545_vm4, %v449_v55, %v584_v60  ;;  %v632_v1 = vsel %vm561_vm5, %v513_v56, %v600_v61  ;;  %v790_v2 = vpop.f32.mrb[24].mxu0  ;;  %v838_v3 = vpop.f32.mrb[24].mxu1 }
 0x14c   :  { %648 = vst [vmem:[#allocation7 + $0x50] sm:$0xff] %v616_v0  ;;  %664 = vst [vmem:[#allocation7 + $0xd0] sm:$0xff] %v632_v1  ;;  %vm546_vm6 = vcmp.gt.f32.partialorder %v452_v62, 0.0  ;;  %v585_v4 = vmul.f32 %v1076_v57, %v452_v62  ;;  %vm562_vm7 = vcmp.gt.f32.partialorder %v516_v63, 0.0  ;;  %v601_v5 = vmul.f32 %v1076_v57, %v516_v63  ;;  %v791_v6 = vpop.f32.mrb[25].mxu0  ;;  %v839_v7 = vpop.f32.mrb[25].mxu1 }
 0x14d   :  { %v792_v8 = vadd.f32 %v791_v6, %v790_v2  ;;  %v840_v9 = vadd.f32 %v839_v7, %v838_v3  ;;  %v793_v10 = vpop.f32.mrb[26].mxu0  ;;  %v841_v11 = vpop.f32.mrb[26].mxu1 }
 0x14e   :  { %v617_v12 = vsel %vm546_vm6, %v452_v62, %v585_v4  ;;  %v633_v13 = vsel %vm562_vm7, %v516_v63, %v601_v5  ;;  %v794_v14 = vpop.f32.mrb[27].mxu0  ;;  %v842_v15 = vpop.f32.mrb[27].mxu1 }
 0x14f   :  { %649 = vst [vmem:[#allocation7 + $0x58] sm:$0xff] %v617_v12  ;;  %665 = vst [vmem:[#allocation7 + $0xd8] sm:$0xff] %v633_v13  ;;  %v457_v16 = vadd.f32 %v792_v8, %v1071_v50  ;;  %v521_v17 = vadd.f32 %v840_v9, %v1071_v50  ;;  %v795_v18 = vadd.f32 %v794_v14, %v793_v10 }
 0x150   :  { %v843_v19 = vadd.f32 %v842_v15, %v841_v11 }
 0x151   :  { %vm547_vm8 = vcmp.gt.f32.partialorder %v457_v16, 0.0  ;;  %v586_v20 = vmul.f32 %v1076_v57, %v457_v16  ;;  %vm563_vm9 = vcmp.gt.f32.partialorder %v521_v17, 0.0  ;;  %v602_v21 = vmul.f32 %v1076_v57, %v521_v17 }
 0x152   :  { %v460_v22 = vadd.f32 %v795_v18, %v1071_v50  ;;  %v524_v23 = vadd.f32 %v843_v19, %v1071_v50 }
 0x153   :  { %v618_v24 = vsel %vm547_vm8, %v457_v16, %v586_v20  ;;  %v634_v25 = vsel %vm563_vm9, %v521_v17, %v602_v21  ;;  %v796_v26 = vpop.f32.mrb[28].mxu0  ;;  %v844_v27 = vpop.f32.mrb[28].mxu1 }
 0x154   :  { %650 = vst [vmem:[#allocation7 + $0x60] sm:$0xff] %v618_v24  ;;  %666 = vst [vmem:[#allocation7 + $0xe0] sm:$0xff] %v634_v25  ;;  %vm548_vm10 = vcmp.gt.f32.partialorder %v460_v22, 0.0  ;;  %v587_v28 = vmul.f32 %v1076_v57, %v460_v22  ;;  %vm564_vm11 = vcmp.gt.f32.partialorder %v524_v23, 0.0  ;;  %v603_v29 = vmul.f32 %v1076_v57, %v524_v23  ;;  %v797_v30 = vpop.f32.mrb[29].mxu0  ;;  %v845_v31 = vpop.f32.mrb[29].mxu1 }
 0x155   :  { %v798_v32 = vadd.f32 %v797_v30, %v796_v26  ;;  %v846_v33 = vadd.f32 %v845_v31, %v844_v27  ;;  %v799_v34 = vpop.f32.mrb[30].mxu0  ;;  %v847_v35 = vpop.f32.mrb[30].mxu1 }
 0x156   :  { %v619_v36 = vsel %vm548_vm10, %v460_v22, %v587_v28  ;;  %v635_v37 = vsel %vm564_vm11, %v524_v23, %v603_v29  ;;  %v800_v38 = vpop.f32.mrb[31].mxu0  ;;  %v848_v39 = vpop.f32.mrb[31].mxu1 }
 0x157   :  { %651 = vst [vmem:[#allocation7 + $0x68] sm:$0xff] %v619_v36  ;;  %667 = vst [vmem:[#allocation7 + $0xe8] sm:$0xff] %v635_v37  ;;  %v465_v40 = vadd.f32 %v798_v32, %v1071_v50  ;;  %v529_v41 = vadd.f32 %v846_v33, %v1071_v50  ;;  %v801_v42 = vadd.f32 %v800_v38, %v799_v34 }
 0x158   :  { %v849_v43 = vadd.f32 %v848_v39, %v847_v35 }
 0x159   :  { %vm549_vm12 = vcmp.gt.f32.partialorder %v465_v40, 0.0  ;;  %v588_v44 = vmul.f32 %v1076_v57, %v465_v40  ;;  %vm565_vm13 = vcmp.gt.f32.partialorder %v529_v41, 0.0  ;;  %v604_v45 = vmul.f32 %v1076_v57, %v529_v41 }
 0x15a   :  { %v468_v46 = vadd.f32 %v801_v42, %v1071_v50  ;;  %v532_v47 = vadd.f32 %v849_v43, %v1071_v50 }
 0x15b   :  { %v620_v48 = vsel %vm549_vm12, %v465_v40, %v588_v44  ;;  %v636_v49 = vsel %vm565_vm13, %v529_v41, %v604_v45 }
 0x15c   :  { %652 = vst [vmem:[#allocation7 + $0x70] sm:$0xff] %v620_v48  ;;  %668 = vst [vmem:[#allocation7 + $0xf0] sm:$0xff] %v636_v49  ;;  %vm550_vm14 = vcmp.gt.f32.partialorder %v468_v46, 0.0  ;;  %v589_v51 = vmul.f32 %v1076_v57, %v468_v46  ;;  %vm566_vm15 = vcmp.gt.f32.partialorder %v532_v47, 0.0  ;;  %v605_v52 = vmul.f32 %v1076_v57, %v532_v47 }
 0x15e   :  { %v621_v53 = vsel %vm550_vm14, %v468_v46, %v589_v51  ;;  %v637_v54 = vsel %vm566_vm15, %v532_v47, %v605_v52 }
 0x15f   :  { %653 = vst [vmem:[#allocation7 + $0x78] sm:$0xff] %v621_v53  ;;  %669 = vst [vmem:[#allocation7 + $0xf8] sm:$0xff] %v637_v54 }
 0x160   :  { %992 = shalt.err (!%p989_p6)
}
 0x161   :  { %s993_s22 = scalar_lea.hbm %s1161_s4, 4096 }
 0x162   :  { %p994_p7 = scmp.ne.s32.totalorder %s1161_s4, %s993_s22  ;;  %p997_p8 = scmp.lt.u32.totalorder %s993_s22, %s1161_s4 }
 0x164   :  { %p999_p9 = pnand %p997_p8, %p994_p7 }
 0x166   :  { %1002 = shalt.err (!%p999_p9)
}
 0x167   :  { %681 = dma.vmem_to_hbm [thread:$0]  %s676_s3, 4096, %s1161_s4, [#allocation4], %s1010_s25, %s1010_s25, %s1011_s26  }
 0x168   :  { %1007 = dma.done.wait [#allocation4], 4096  }
 0x169   :  { %1008 = vsyncadd [#allocation4], 4294963200 }
 0x16a   :  { %685 = vsyncpa [#allocation3], 1 }
 0x16b   :  { %686 = vsyncpa [#allocation6], 1 }
 0x16c   :  { %687 = vsyncpa [#allocation4], 1 }

</bundles_post_ra>
